<compile_context>
chip_gen: v5e
topology: v5e:2x2
jax: 0.10.0
libtpu: 0.0.40
codegen_flags: <defaults>
</compile_context>

<pallas_src>
import functools

import jax
import jax.numpy as jnp
from jax import lax
from jax.experimental import pallas as pl
from jax.experimental.pallas import tpu as pltpu

LANES = 128                      # lane width of a vreg
SUBLANES = 8                     # f32 sublane height of a vreg
TILE_BYTES = 4 * 1024 * 1024     # per input, per pipeline buffer (DMA tile)
CHUNK_BYTES = 256 * 1024         # per-chunk compute footprint inside the tile


def _cdiv(a, b):
    return (a + b - 1) // b


def _round_up(x, m):
    return ((x + m - 1) // m) * m


@functools.lru_cache(maxsize=None)
def _num_tensorcores():
    """TensorCores per chip: 2 on v7x, 1 on v5e/v6e. Conservative fallback: 1."""
    try:
        dev = jax.devices()[0]
        if dev.platform != "tpu":
            return 1
        kind = dev.device_kind.lower()
    except Exception:
        return 1
    if "v7" in kind or "tpu7" in kind or "7x" in kind:
        return 2
    # Ask the runtime when available (future generations / renamed kind strings).
    try:
        info = pltpu.get_tpu_info()
        for name in ("tensorcores_per_chip", "num_tensorcores",
                     "cores_per_chip", "num_cores_per_chip"):
            v = getattr(info, name, None)
            if isinstance(v, int) and v >= 1:
                return min(v, 2)
    except Exception:
        pass
    return 1


def _l1_sum_kernel(a_ref, b_ref, out_ref, *, bpp, rows, tm, chunk, needs_mask):
    """Accumulate sum(|a - b|) for this partition's row range into out_ref.

    out_ref is one (8, 128) f32 block per partition, resident in VMEM across
    the inner ("arbitrary") grid axis (its block index depends only on p).
    """
    p = pl.program_id(0)
    i = pl.program_id(1)

    @pl.when(i == 0)
    def _():
        out_ref[...] = jnp.zeros_like(out_ref)

    chunked = (tm > chunk) and (tm % chunk == 0)
    n_chunks = tm // chunk if chunked else 1
    cr = chunk if chunked else tm            # rows handled per compute step

    def chunk_sum(row0, limit):
        """(8,128) partial sum of |a-b| over tile rows [row0, row0+cr)."""
        if chunked:
            sl = pl.ds(pl.multiple_of(row0, cr), cr)
            a = a_ref[sl, :].astype(jnp.float32)
            b = b_ref[sl, :].astype(jnp.float32)
        else:
            a = a_ref[...].astype(jnp.float32)
            b = b_ref[...].astype(jnp.float32)
        d = jnp.abs(a - b)
        if limit is not None:
            # Select (not multiply) so NaN/Inf garbage from OOB reads cannot
            # propagate; `limit` is rows-still-valid at the start of this chunk.
            r = lax.broadcasted_iota(jnp.int32, (cr, LANES), 0)
            d = jnp.where(r < limit, d, jnp.float32(0.0))
        # (cr,128) -> (cr//8, 8, 128) -> elementwise-add down to one (8,128)
        # vreg: pure VPU work; the cross-lane reduce is deferred to the wrapper.
        return d.reshape(cr // SUBLANES, SUBLANES, LANES).sum(axis=0)

    def accumulate(limit):
        if not chunked:
            out_ref[...] += chunk_sum(0, limit)
        else:
            def body(j, acc):
                row0 = j * cr
                lim_j = None if limit is None else (limit - row0)
                return acc + chunk_sum(row0, lim_j)
            out_ref[...] += lax.fori_loop(
                0, n_chunks, body, jnp.zeros((SUBLANES, LANES), jnp.float32))

    if not needs_mask:
        accumulate(None)
    else:
        start = (p * bpp + i) * tm           # first logical row of this tile

        @pl.when(start + tm <= rows)         # fully in-bounds tile: fast path
        def _():
            accumulate(None)

        @pl.when(start + tm > rows)          # overhanging / clamped tile: mask
        def _():
            accumulate(rows - start)


def _l1_loss_impl(sr, hr):
    assert sr.shape == hr.shape, (sr.shape, hr.shape)
    n = sr.size
    a = sr.reshape(-1)
    b = hr.reshape(-1)

    # Tail of < 128 elements (if n is not lane-aligned): tiny, done in plain
    # JAX so the bulk of the tensor needs no HBM padding pass at all.
    n_main = (n // LANES) * LANES
    tail_sum = jnp.float32(0.0)
    if n_main != n:
        tail_sum = jnp.sum(
            jnp.abs(a[n_main:].astype(jnp.float32) - b[n_main:].astype(jnp.float32)))
    if n_main == 0:
        return tail_sum / n

    rows = n_main // LANES
    a2 = a[:n_main].reshape(rows, LANES)
    b2 = b[:n_main].reshape(rows, LANES)

    # dtype-aware tiling: keep bytes-per-step constant and respect sublane packing.
    itemsize = jnp.dtype(sr.dtype).itemsize
    sub = max(SUBLANES, 32 // itemsize)                      # 8 f32 / 16 bf16 / 32 int8
    chunk = max(sub, (CHUNK_BYTES // (LANES * itemsize)) // sub * sub)
    max_tm = max(chunk, (TILE_BYTES // (LANES * itemsize)) // chunk * chunk)

    tm = min(max_tm, _round_up(rows, sub))
    if tm > chunk:
        tm = min(max_tm, _round_up(tm, chunk))

    blocks = _cdiv(rows, tm)

    # 2-way TensorCore split only when it is real (CORE_PARALLEL available and
    # the chip actually has 2 TCs); otherwise the partition machinery is skipped.
    core_parallel = getattr(pltpu, "CORE_PARALLEL", None)
    num_tc = _num_tensorcores() if core_parallel is not None else 1
    num_parts = max(1, min(num_tc, blocks))
    bpp = _cdiv(blocks, num_parts)                           # row-blocks per partition
    needs_mask = (num_parts * bpp * tm != rows)

    if num_parts * bpp == blocks:
        in_map = lambda p, i: (p * bpp + i, 0)
    else:
        # Clamp overhang block indices in-bounds; the in-kernel mask zeroes
        # their contribution (start >= rows there).
        last_block = blocks - 1
        in_map = lambda p, i: (jnp.minimum(p * bpp + i, last_block), 0)

    kernel = functools.partial(
        _l1_sum_kernel, bpp=bpp, rows=rows, tm=tm, chunk=chunk,
        needs_mask=needs_mask)

    if num_parts > 1:
        dim_sem = (core_parallel, pltpu.ARBITRARY)
    else:
        dim_sem = ("arbitrary", "arbitrary")

    cost = pl.CostEstimate(
        flops=3 * n_main,
        transcendentals=0,
        bytes_accessed=2 * n_main * itemsize + num_parts * SUBLANES * LANES * 4)

    partials = pl.pallas_call(
        kernel,
        out_shape=jax.ShapeDtypeStruct((num_parts * SUBLANES, LANES), jnp.float32),
        grid_spec=pltpu.PrefetchScalarGridSpec(
            num_scalar_prefetch=0,
            grid=(num_parts, bpp),
            in_specs=[
                pl.BlockSpec((tm, LANES), in_map),
                pl.BlockSpec((tm, LANES), in_map),
            ],
            out_specs=pl.BlockSpec((SUBLANES, LANES), lambda p, i: (p, 0)),
        ),
        compiler_params=pltpu.CompilerParams(
            dimension_semantics=dim_sem,
            vmem_limit_bytes=32 * 1024 * 1024,
            allow_input_fusion=[True, True],
        ),
        cost_estimate=cost,
    )(a2, b2)

    return (jnp.sum(partials) + tail_sum) / n


l1_loss_pallas = jax.jit(_l1_loss_impl)


class GetLossPallas:
    """JAX/Pallas equivalent of model/SSR/EPIT_0.py::get_loss (torch.nn.L1Loss)."""

    def __init__(self, args=None):
        pass  # L1Loss has no parameters.

    def __call__(self, out, HR, degrade_info=None):
        return l1_loss_pallas(out["SR"], HR)


if __name__ == "__main__":
    key = jax.random.PRNGKey(0)
    keys = jax.random.split(key, 8)

    loss_fn = GetLossPallas(args=None)

    def check(sr, hr, rtol=1e-4, atol=1e-6):
        loss = jax.block_until_ready(loss_fn({"SR": sr}, hr))
        ref = jnp.mean(jnp.abs(sr.astype(jnp.float32) - hr.astype(jnp.float32)))
        assert jnp.allclose(loss, ref, rtol=rtol, atol=atol), (loss, ref)

    # Case 1: small NCHW SR/HR pair (lane-aligned, single small tile, no mask).
    sr = jax.random.normal(keys[0], (2, 4, 16, 16), dtype=jnp.float32)
    hr = jax.random.normal(keys[1], (2, 4, 16, 16), dtype=jnp.float32)
    check(sr, hr)

    # Case 2: ragged element count (sub-128 tail in JAX + masked non-chunked tile).
    sr2 = jax.random.normal(keys[2], (1, 3, 17, 19), dtype=jnp.float32)
    hr2 = jax.random.normal(keys[3], (1, 3, 17, 19), dtype=jnp.float32)
    check(sr2, hr2)

    # Case 3: chunked, fully aligned tile (rows = 1024 = tm, unmasked fast path).
    sr3 = jax.random.normal(keys[4], (2, 1, 512, 128), dtype=jnp.float32)
    hr3 = jax.random.normal(keys[5], (2, 1, 512, 128), dtype=jnp.float32)
    check(sr3, hr3)

    # Case 4: chunked + ragged tile (rows = 600, tm rounds to 1024, masked path).
    sr4 = jax.random.normal(keys[6], (1, 1, 600, 128), dtype=jnp.float32)
    hr4 = jax.random.normal(keys[7], (1, 1, 600, 128), dtype=jnp.float32)
    check(sr4, hr4)

    print("KERNEL_OK")
</pallas_src>

<mosaic_0001>
module attributes {stable_mosaic.version = 11 : i64} {
  func.func @_l1_sum_kernel(%arg0: i32, %arg1: i32, %arg2: memref<16x128xf32, #tpu.memory_space<vmem>>, %arg3: memref<16x128xf32, #tpu.memory_space<vmem>>, %arg4: memref<8x128xf32, #tpu.memory_space<vmem>>) attributes {dimension_semantics = [#tpu.dimension_semantics<arbitrary>, #tpu.dimension_semantics<arbitrary>], iteration_bounds = array<i64: 1, 1>, scalar_prefetch = 0 : i64, scratch_operands = 0 : i64, tpu.core_type = #tpu.core_type<tc>, window_params = [{transform_indices = @transform_0, window_bounds = array<i64: 16, 128>}, {transform_indices = @transform_1, window_bounds = array<i64: 16, 128>}, {transform_indices = @transform_2, window_bounds = array<i64: 8, 128>}]} {
    %c0_i32 = arith.constant 0 : i32
    %0 = arith.cmpi eq, %arg1, %c0_i32 : i32
    %1 = arith.extui %0 : i1 to i32
    %c0_i32_0 = arith.constant 0 : i32
    %2 = arith.cmpi ne, %1, %c0_i32_0 : i32
    scf.if %2 {
      %cst_8 = arith.constant 0.000000e+00 : f32
      %12 = vector.broadcast %cst_8 : f32 to vector<8x128xf32>
      %c0_9 = arith.constant 0 : index
      %c0_10 = arith.constant 0 : index
      %13 = vector.load %arg4[%c0_9, %c0_10] : memref<8x128xf32, #tpu.memory_space<vmem>>, vector<8x128xf32>
      tpu.vector_store %arg4[%c0_9, %c0_10], %12 {strides = array<i32>} : memref<8x128xf32, #tpu.memory_space<vmem>>, vector<8x128xf32>,
    } else {
    }
    %c0 = arith.constant 0 : index
    %c0_1 = arith.constant 0 : index
    %3 = vector.load %arg4[%c0, %c0_1] : memref<8x128xf32, #tpu.memory_space<vmem>>, vector<8x128xf32>
    %c0_2 = arith.constant 0 : index
    %c0_3 = arith.constant 0 : index
    %4 = vector.load %arg2[%c0_2, %c0_3] : memref<16x128xf32, #tpu.memory_space<vmem>>, vector<16x128xf32>
    %c0_4 = arith.constant 0 : index
    %c0_5 = arith.constant 0 : index
    %5 = vector.load %arg3[%c0_4, %c0_5] : memref<16x128xf32, #tpu.memory_space<vmem>>, vector<16x128xf32>
    %6 = arith.subf %4, %5 : vector<16x128xf32>
    %7 = math.absf %6 : vector<16x128xf32>
    %8 = vector.shape_cast %7 : vector<16x128xf32> to vector<2x8x128xf32>
    %cst = arith.constant dense<0.000000e+00> : vector<8x128xf32>
    %9 = vector.multi_reduction <add>, %8, %cst [0] : vector<2x8x128xf32> to vector<8x128xf32>
    %10 = arith.addf %3, %9 : vector<8x128xf32>
    %c0_6 = arith.constant 0 : index
    %c0_7 = arith.constant 0 : index
    %11 = vector.load %arg4[%c0_6, %c0_7] : memref<8x128xf32, #tpu.memory_space<vmem>>, vector<8x128xf32>
    tpu.vector_store %arg4[%c0_6, %c0_7], %10 {strides = array<i32>} : memref<8x128xf32, #tpu.memory_space<vmem>>, vector<8x128xf32>,
    return
  }
  func.func @transform_0(%arg0: i32, %arg1: i32) -> (i32, i32) {
    %c1_i32 = arith.constant 1 : i32
    %0 = arith.muli %arg0, %c1_i32 : i32
    %1 = arith.addi %0, %arg1 : i32
    %c0_i32 = arith.constant 0 : i32
    %c0_i32_0 = arith.constant 0 : i32
    return %1, %c0_i32 : i32, i32
  }
  func.func @transform_1(%arg0: i32, %arg1: i32) -> (i32, i32) {
    %c1_i32 = arith.constant 1 : i32
    %0 = arith.muli %arg0, %c1_i32 : i32
    %1 = arith.addi %0, %arg1 : i32
    %c0_i32 = arith.constant 0 : i32
    %c0_i32_0 = arith.constant 0 : i32
    return %1, %c0_i32 : i32, i32
  }
  func.func @transform_2(%arg0: i32, %arg1: i32) -> (i32, i32) {
    %c0_i32 = arith.constant 0 : i32
    %c0_i32_0 = arith.constant 0 : i32
    return %arg0, %c0_i32 : i32, i32
  }
}

</mosaic_0001>

<bundles_post_ra>
// kernel: _l1_loss_impl.1
= control target key start
LH: loop header
LB: loop body
LE: loop exit
PB: predicated region body
PF: predicated region fallthrough
CT: control target
= control target key end

     0   :  { %s119_s0 = inlined_call_operand.vmem [shape: f32[16,128], index: 0, kind: input, shape index: {}]   ;;  %s120_s1 = inlined_call_operand.vmem [shape: f32[16,128], index: 1, kind: input, shape index: {}]   ;;  %s121_s2 = inlined_call_operand.vmem [shape: f32[8,128], index: 2, kind: output, shape index: {}]  }
   0x1   :  { %v61_v0 = vld [vmem:[%s119_s0] sm:$0xff]  ;;  %v62_v1 = vld [vmem:[%s119_s0 + $0x8] sm:$0xff] }
   0x2   :  { %v63_v2 = vld [vmem:[%s120_s1] sm:$0xff]  ;;  %v64_v3 = vld [vmem:[%s120_s1 + $0x8] sm:$0xff] }
   0x3   :  { %v65_v4 = vsub.f32 %v61_v0, %v63_v2  ;;  %v66_v5 = vsub.f32 %v62_v1, %v64_v3 }
   0x5   :  { %v67_v6 = vand.u32 2147483647, %v65_v4  ;;  %v68_v7 = vand.u32 2147483647, %v66_v5 }
   0x7   :  { %v69_v8 = vadd.f32 %v68_v7, %v67_v6 }
   0x9   :  { %71 = vst [vmem:[%s121_s2] sm:$0xff] %v69_v8 }

</bundles_post_ra>
